<compile_context>
chip_gen: v7x
topology: tpu7x:2x2x1
jax: 0.10.0
libtpu: 0.0.40
codegen_flags: <defaults>
</compile_context>

<pallas_src>
import jax
import jax.numpy as jnp
from jax.experimental import pallas as pl
from jax.experimental.pallas import tpu as pltpu

DIM = 512
PATCH = 4


def _round_up(x: int, m: int) -> int:
    return (x + m - 1) // m * m


def _patch_embed_kernel(p_ref, w_ref, b_ref, o_ref):
    # p_ref: (tm, K) patches  w_ref: (K, DIM)  b_ref: (1, DIM)  o_ref: (tm, DIM)
    acc = jnp.dot(p_ref[...], w_ref[...], preferred_element_type=jnp.float32)
    acc = acc + b_ref[...].astype(jnp.float32)
    o_ref[...] = jnp.maximum(acc, 0.0).astype(o_ref.dtype)


def patch_embed_matmul(patches, weight, bias, *, tm=1024, out_dtype=None):
    """ReLU(patches @ weight + bias) with an M-tiled Pallas kernel.

    patches: (M, K) float32, weight: (K, N), bias: (N,).
    """
    M, K = patches.shape
    Kw, N = weight.shape
    assert K == Kw and bias.shape == (N,)
    out_dtype = patches.dtype if out_dtype is None else out_dtype

    # Large M-tile; clamp to the (8-aligned) problem size so tiny problems still get
    # a single full block, and keep tm a sublane multiple.  For big M this leaves
    # multiple grid steps, keeping the "parallel" axis splittable across v7x's 2 TCs.
    tm = _round_up(max(8, min(tm, _round_up(M, 8))), 8)
    grid_m = pl.cdiv(M, tm)  # ragged tail handled by Pallas block padding / masking

    bias2d = bias.reshape(1, N)
    return pl.pallas_call(
        _patch_embed_kernel,
        out_shape=jax.ShapeDtypeStruct((M, N), out_dtype),
        grid_spec=pltpu.PrefetchScalarGridSpec(
            num_scalar_prefetch=0,
            grid=(grid_m,),
            in_specs=[
                pl.BlockSpec((tm, K), lambda i: (i, 0)),   # streamed patch tile
                pl.BlockSpec((K, N), lambda i: (0, 0)),    # weight: VMEM-resident
                pl.BlockSpec((1, N), lambda i: (0, 0)),    # bias:   VMEM-resident
            ],
            out_specs=pl.BlockSpec((tm, N), lambda i: (i, 0)),
        ),
        compiler_params=pltpu.CompilerParams(
            dimension_semantics=("parallel",),
        ),
    )(patches, weight, bias2d)


def pre_procee_forward(x, conv_weight, conv_bias, *, tm=1024, out_dtype=None):
    """x: (N, 1, D, H, W) float32 (NCDHW, same convention as the PyTorch module).

    Returns (N, D//4, (H//4)*(W//4), DIM), matching
    ReLU(Conv3d(x)).flatten(3).permute(0, 2, 3, 1).
    """
    N, C, D, H, W = x.shape
    assert C == 1 and D % PATCH == 0 and H % PATCH == 0 and W % PATCH == 0
    Dp, Hp, Wp = D // PATCH, H // PATCH, W // PATCH

    # Non-overlapping 4x4x4 patch extraction (one XLA transpose).  Within-patch
    # flattening order (kd, kh, kw) matches conv_weight.reshape(DIM, 64).
    xp = x.reshape(N, Dp, PATCH, Hp, PATCH, Wp, PATCH)
    xp = xp.transpose(0, 1, 3, 5, 2, 4, 6)              # (N, Dp, Hp, Wp, 4, 4, 4)
    patches = xp.reshape(N * Dp * Hp * Wp, PATCH ** 3)  # (M, 64)

    w = conv_weight.reshape(DIM, PATCH ** 3).T          # (64, DIM)
    out = patch_embed_matmul(patches, w, conv_bias, tm=tm, out_dtype=out_dtype)

    # conv output (N, DIM, Dp, Hp, Wp) -> flatten(3) -> permute(0, 2, 3, 1)
    return out.reshape(N, Dp, Hp * Wp, DIM)


def _reference(x, conv_weight, conv_bias):
    """Pure-JAX reference of the same patch-embedding math."""
    N, _, D, H, W = x.shape
    Dp, Hp, Wp = D // PATCH, H // PATCH, W // PATCH
    xp = x.reshape(N, Dp, PATCH, Hp, PATCH, Wp, PATCH).transpose(0, 1, 3, 5, 2, 4, 6)
    pts = xp.reshape(-1, PATCH ** 3)
    ref = jnp.maximum(pts @ conv_weight.reshape(DIM, -1).T + conv_bias, 0.0)
    return ref.reshape(N, Dp, Hp * Wp, DIM)


if __name__ == "__main__":
    k1, k2, k3, k4 = jax.random.split(jax.random.PRNGKey(0), 4)

    # Deterministic PyTorch-style init (fan_in = 1*4*4*4).
    fan_in = PATCH ** 3
    bound = 1.0 / jnp.sqrt(jnp.float32(fan_in))
    conv_weight = jax.random.uniform(
        k1, (DIM, 1, PATCH, PATCH, PATCH), jnp.float32, -bound, bound)
    conv_bias = jax.random.uniform(k2, (DIM,), jnp.float32, -bound, bound)

    # Main case: batch=2, 1 channel, 16x16x16 volume -> M = 2*4*4*4 = 128 patches.
    x = jax.random.normal(k3, (2, 1, 16, 16, 16), dtype=jnp.float32)
    out = jax.block_until_ready(pre_procee_forward(x, conv_weight, conv_bias))
    assert out.shape == (2, 4, 16, DIM), out.shape
    ref = _reference(x, conv_weight, conv_bias)
    assert jnp.allclose(out, ref, atol=1e-4, rtol=1e-4)

    # Optional bf16 output path (halves the dominant HBM write stream on v6e/v7x).
    out_bf16 = jax.block_until_ready(
        pre_procee_forward(x, conv_weight, conv_bias, out_dtype=jnp.bfloat16))
    assert out_bf16.dtype == jnp.bfloat16
    assert jnp.allclose(out_bf16.astype(jnp.float32), ref, atol=5e-2, rtol=5e-2)

    # Ragged-M case: (1, 1, 8, 12, 8) -> M = 12 patches with tm=8 => 2 grid steps,
    # last block partially out of bounds (exercises the cdiv grid / masked tail).
    x2 = jax.random.normal(k4, (1, 1, 8, 12, 8), dtype=jnp.float32)
    out2 = jax.block_until_ready(pre_procee_forward(x2, conv_weight, conv_bias, tm=8))
    assert out2.shape == (1, 2, 6, DIM), out2.shape
    ref2 = _reference(x2, conv_weight, conv_bias)
    assert jnp.allclose(out2, ref2, atol=1e-4, rtol=1e-4)

    print("KERNEL_OK")
</pallas_src>

<mosaic_0001>
module attributes {stable_mosaic.version = 11 : i64} {
  func.func @_patch_embed_kernel(%arg0: i32, %arg1: memref<128x64xf32, #tpu.memory_space<vmem>>, %arg2: memref<64x512xf32, #tpu.memory_space<vmem>>, %arg3: memref<1x512xf32, #tpu.memory_space<vmem>>, %arg4: memref<128x512xf32, #tpu.memory_space<vmem>>) attributes {dimension_semantics = [#tpu.dimension_semantics<parallel>], iteration_bounds = array<i64: 1>, scalar_prefetch = 0 : i64, scratch_operands = 0 : i64, tpu.core_type = #tpu.core_type<tc>, window_params = [{transform_indices = @transform_0, window_bounds = array<i64: 128, 64>}, {pipeline_mode = #tpu.pipeline_mode<synchronous>, transform_indices = @transform_1, window_bounds = array<i64: 64, 512>}, {pipeline_mode = #tpu.pipeline_mode<synchronous>, transform_indices = @transform_2, window_bounds = array<i64: 1, 512>}, {transform_indices = @transform_3, window_bounds = array<i64: 128, 512>}]} {
    %c0 = arith.constant 0 : index
    %c0_0 = arith.constant 0 : index
    %0 = vector.load %arg1[%c0, %c0_0] : memref<128x64xf32, #tpu.memory_space<vmem>>, vector<128x64xf32>
    %c0_1 = arith.constant 0 : index
    %c0_2 = arith.constant 0 : index
    %1 = vector.load %arg2[%c0_1, %c0_2] : memref<64x512xf32, #tpu.memory_space<vmem>>, vector<64x512xf32>
    %cst = arith.constant dense<0.000000e+00> : vector<128x512xf32>
    %2 = tpu.matmul %0, %1, %cst {dimension_numbers = #tpu.dot_dimension_numbers<[1], [0], [0], [1], [0, 0, 1, 1], [], []>} : vector<128x64xf32>, vector<64x512xf32>, vector<128x512xf32> -> vector<128x512xf32>
    %c0_3 = arith.constant 0 : index
    %c0_4 = arith.constant 0 : index
    %3 = vector.load %arg3[%c0_3, %c0_4] : memref<1x512xf32, #tpu.memory_space<vmem>>, vector<1x512xf32>
    %4 = vector.broadcast %3 : vector<1x512xf32> to vector<128x512xf32>
    %5 = arith.addf %2, %4 : vector<128x512xf32>
    %cst_5 = arith.constant 0.000000e+00 : f32
    %6 = vector.broadcast %cst_5 : f32 to vector<128x512xf32>
    %7 = arith.maximumf %5, %6 : vector<128x512xf32>
    %c0_6 = arith.constant 0 : index
    %c0_7 = arith.constant 0 : index
    %8 = vector.load %arg4[%c0_6, %c0_7] : memref<128x512xf32, #tpu.memory_space<vmem>>, vector<128x512xf32>
    tpu.vector_store %arg4[%c0_6, %c0_7], %7 {strides = array<i32>} : memref<128x512xf32, #tpu.memory_space<vmem>>, vector<128x512xf32>,
    return
  }
  func.func @transform_0(%arg0: i32) -> (i32, i32) {
    %c0_i32 = arith.constant 0 : i32
    %c0_i32_0 = arith.constant 0 : i32
    return %arg0, %c0_i32 : i32, i32
  }
  func.func @transform_1(%arg0: i32) -> (i32, i32) {
    %c0_i32 = arith.constant 0 : i32
    %c0_i32_0 = arith.constant 0 : i32
    %c0_i32_1 = arith.constant 0 : i32
    return %c0_i32, %c0_i32_0 : i32, i32
  }
  func.func @transform_2(%arg0: i32) -> (i32, i32) {
    %c0_i32 = arith.constant 0 : i32
    %c0_i32_0 = arith.constant 0 : i32
    %c0_i32_1 = arith.constant 0 : i32
    return %c0_i32, %c0_i32_0 : i32, i32
  }
  func.func @transform_3(%arg0: i32) -> (i32, i32) {
    %c0_i32 = arith.constant 0 : i32
    %c0_i32_0 = arith.constant 0 : i32
    return %arg0, %c0_i32 : i32, i32
  }
}

</mosaic_0001>

<bundles_post_ra>
// kernel: tpu_custom_call.1
= control target key start
LH: loop header
LB: loop body
LE: loop exit
PB: predicated region body
PF: predicated region fallthrough
CT: control target
= control target key end

     0   :  { %8 = vsyncpa [#allocation3], 0  ;;  %s974_s0 = inlined_call_operand.vmem [shape: f32[128,64], index: 0, kind: input, shape index: {}]   ;;  %s975_s1 = inlined_call_operand.hbm [shape: f32[64,512], index: 1, kind: input, shape index: {}]   ;;  %s976_s2 = inlined_call_operand.vmem [shape: f32[1,512], index: 2, kind: input, shape index: {}]   ;;  %s977_s3 = inlined_call_operand.hbm [shape: f32[128,512], index: 3, kind: output, shape index: {}]  }
   0x1   :  { %9 = vsyncpa [#allocation4], 0  ;;  %s732_s12 = smov [#allocation2]   ;;  %s684_s16 = scalar_lea.hbm %s975_s1, 4096 }
   0x2   :  { %s17_s13 = sshll.u32 %s732_s12, 4  ;;  %p685_p0 = scmp.ne.s32.totalorder %s975_s1, %s684_s16  ;;  %s18_s13 = int_to_ptr.vmem [resolvable:$true] %s17_s13 }
   0x3   :  { %p688_p1 = scmp.lt.u32.totalorder %s684_s16, %s975_s1 }
   0x5   :  { %p690_p2 = pnand %p688_p1, %p685_p0 }
   0x7   :  { %693 = shalt.err (!%p690_p2)
}
   0x8   :  { %s694_s21 = scalar_lea.vmem %s18_s13, 4096  ;;  %p699_p4 = scmp.lt.s32.totalorder %s18_s13, %s18_s13 }
   0x9   :  { %p695_p3 = scmp.ne.s32.totalorder %s18_s13, %s694_s21  ;;  %p700_p5 = scmp.lt.s32.totalorder %s694_s21, %s694_s21 }
   0xb   :  { %p701_p6 = por %p700_p5, %p699_p4 }
   0xd   :  { %p702_p7 = pnand %p701_p6, %p695_p3 }
   0xf   :  { %705 = shalt.err (!%p702_p7)
}
  0x10   :  { %s733_s22 = smov 512   ;;  %s734_s23 = smov 32  }
  0x11   :  { %23 = dma.hbm_to_vmem [thread:$0]  %s975_s1, 4096, %s18_s13, [#allocation3], %s733_s22, %s733_s22, %s734_s23  }
  0x12   :  { %728 = dma.done.wait [#allocation3], 4096  }
  0x13   :  { %729 = vsyncadd [#allocation3], 4294963200  ;;  %v735_v0 = vmov 0.0   ;;  %v46_v1 = vld [vmem:[#allocation2 + $0x8] sm:$0xff]  ;;  %v48_v3 = vld [vmem:[#allocation2 + $0x18] sm:$0xff]  ;;  %vm99_vm0 = vcmask 523264  }
  0x14   :  { %212 = vmatprep.mubr.f32.mxu0 %v735_v0  ;;  %373 = vmatprep.mubr.f32.mxu1 %v735_v0  ;;  %v50_v2 = vld [vmem:[#allocation2 + $0x28] sm:$0xff]  ;;  %v52_v5 = vld [vmem:[#allocation2 + $0x38] sm:$0xff]  ;;  %v45_v6 = vld [vmem:[#allocation2] sm:$0xff] }
  0x15   :  { %v647_v4 = vpack.c.bf16 %v50_v2, %v46_v1  ;;  %v49_v7 = vld [vmem:[#allocation2 + $0x20] sm:$0xff]  ;;  %v663_v8 = vpack.c.bf16 %v52_v5, %v48_v3  ;;  %v47_v10 = vld [vmem:[#allocation2 + $0x10] sm:$0xff]  ;;  %v54_v12 = vld [vmem:[#allocation2 + $0x48] sm:$0xff]  ;;  %v79_v2 = vlaneseq }
  0x16   :  { %v649_v9 = vpack.c.bf16 %v49_v7, %v45_v6  ;;  %v51_v11 = vld [vmem:[#allocation2 + $0x30] sm:$0xff]  ;;  %v58_v14 = vld [vmem:[#allocation2 + $0x68] sm:$0xff]  ;;  %v56_v15 = vld [vmem:[#allocation2 + $0x58] sm:$0xff] }
  0x17   :  { %648 = vmatprep.subr.bf16.mxu0 %v647_v4  ;;  %v665_v13 = vpack.c.bf16 %v51_v11, %v47_v10  ;;  %v60_v16 = vld [vmem:[#allocation2 + $0x78] sm:$0xff]  ;;  %664 = vmatprep.subr.bf16.mxu1 %v663_v8  ;;  %v651_v17 = vpack.c.bf16 %v58_v14, %v54_v12  ;;  %v53_v19 = vld [vmem:[#allocation2 + $0x40] sm:$0xff]  ;;  %v55_v21 = vld [vmem:[#allocation2 + $0x50] sm:$0xff]  ;;  %v80_v3 = vshrl.u32 %v79_v2, 7 }
  0x18   :  { %650 = vmatpush1.bf16.msra.mxu0 %v649_v9  ;;  %v667_v18 = vpack.c.bf16 %v60_v16, %v56_v15  ;;  %v57_v20 = vld [vmem:[#allocation2 + $0x60] sm:$0xff]  ;;  %v59_v23 = vld [vmem:[#allocation2 + $0x70] sm:$0xff]  ;;  %v62_v24 = vld [vmem:[#allocation2 + $0x88] sm:$0xff] }
  0x19   :  { %666 = vmatpush1.bf16.msra.mxu1 %v665_v13  ;;  %v653_v22 = vpack.c.bf16 %v57_v20, %v53_v19  ;;  %v66_v25 = vld [vmem:[#allocation2 + $0xa8] sm:$0xff]  ;;  %652 = vmatprep.subr.bf16.mxu0 %v651_v17  ;;  %v669_v26 = vpack.c.bf16 %v59_v23, %v55_v21  ;;  %v64_v28 = vld [vmem:[#allocation2 + $0x98] sm:$0xff]  ;;  %v61_v30 = vld [vmem:[#allocation2 + $0x80] sm:$0xff]  ;;  %v81_v4 = vsub.s32 0, %v80_v3  ;;  %v89_v6 = vsub.s32 2, %v80_v3 }
  0x1a   :  { %668 = vmatprep.subr.bf16.mxu1 %v667_v18  ;;  %v655_v27 = vpack.c.bf16 %v66_v25, %v62_v24  ;;  %v68_v29 = vld [vmem:[#allocation2 + $0xb8] sm:$0xff]  ;;  %v65_v32 = vld [vmem:[#allocation2 + $0xa0] sm:$0xff]  ;;  %v63_v33 = vld [vmem:[#allocation2 + $0x90] sm:$0xff]  ;;  %v85_v7 = vsub.s32 1, %v80_v3  ;;  %v93_v8 = vsub.s32 3, %v80_v3 }
  0x1b   :  { %v671_v31 = vpack.c.bf16 %v68_v29, %v64_v28  ;;  %v67_v34 = vld [vmem:[#allocation2 + $0xb0] sm:$0xff]  ;;  %v657_v35 = vpack.c.bf16 %v65_v32, %v61_v30  ;;  %v70_v36 = vld [vmem:[#allocation2 + $0xc8] sm:$0xff]  ;;  %v72_v38 = vld [vmem:[#allocation2 + $0xd8] sm:$0xff] }
  0x1c   :  { %654 = vmatpush1.bf16.msra.mxu0 %v653_v22  ;;  %v74_v37 = vld [vmem:[#allocation2 + $0xe8] sm:$0xff]  ;;  %v673_v39 = vpack.c.bf16 %v67_v34, %v63_v33  ;;  %v76_v41 = vld [vmem:[#allocation2 + $0xf8] sm:$0xff]  ;;  %v69_v42 = vld [vmem:[#allocation2 + $0xc0] sm:$0xff] }
  0x1d   :  { %670 = vmatpush1.bf16.msra.mxu1 %v669_v26  ;;  %656 = vmatprep.subr.bf16.mxu0 %v655_v27  ;;  %v659_v40 = vpack.c.bf16 %v74_v37, %v70_v36  ;;  %v73_v43 = vld [vmem:[#allocation2 + $0xe0] sm:$0xff]  ;;  %v675_v44 = vpack.c.bf16 %v76_v41, %v72_v38  ;;  %v71_v45 = vld [vmem:[#allocation2 + $0xd0] sm:$0xff]  ;;  %v30_v50 = vld [vmem:[%s974_s0 + $0x8] sm:$0xff] }
  0x1e   :  { %672 = vmatprep.subr.bf16.mxu1 %v671_v31  ;;  %v75_v46 = vld [vmem:[#allocation2 + $0xf0] sm:$0xff]  ;;  %v661_v47 = vpack.c.bf16 %v73_v43, %v69_v42  ;;  %v29_v49 = vld [vmem:[%s974_s0] sm:$0xff]  ;;  %v32_v52 = vld [vmem:[%s974_s0 + $0x18] sm:$0xff] }
  0x1f   :  { %v677_v48 = vpack.c.bf16 %v75_v46, %v71_v45  ;;  %v31_v51 = vld [vmem:[%s974_s0 + $0x10] sm:$0xff]  ;;  %v33_v53 = vld [vmem:[%s974_s0 + $0x20] sm:$0xff]  ;;  %v34_v54 = vld [vmem:[%s974_s0 + $0x28] sm:$0xff] }
  0x20   :  { %658 = vmatpush1.bf16.msra.mxu0 %v657_v35  ;;  %v35_v55 = vld [vmem:[%s974_s0 + $0x30] sm:$0xff]  ;;  %v36_v56 = vld [vmem:[%s974_s0 + $0x38] sm:$0xff]  ;;  %v37_v57 = vld [vmem:[%s974_s0 + $0x40] sm:$0xff] }
  0x21   :  { %674 = vmatpush1.bf16.msra.mxu1 %v673_v39  ;;  %660 = vmatprep.subr.bf16.mxu0 %v659_v40  ;;  %v38_v58 = vld [vmem:[%s974_s0 + $0x48] sm:$0xff]  ;;  %v39_v59 = vld [vmem:[%s974_s0 + $0x50] sm:$0xff]  ;;  %v40_v60 = vld [vmem:[%s974_s0 + $0x58] sm:$0xff] }
  0x22   :  { %676 = vmatprep.subr.bf16.mxu1 %v675_v44  ;;  %v41_v61 = vld [vmem:[%s974_s0 + $0x60] sm:$0xff]  ;;  %v42_v62 = vld [vmem:[%s974_s0 + $0x68] sm:$0xff]  ;;  %v43_v63 = vld [vmem:[%s974_s0 + $0x70] sm:$0xff] }
  0x23   :  { %v44_v1 = vld [vmem:[%s974_s0 + $0x78] sm:$0xff]  ;;  %v77_v5 = vld [vmem:[%s976_s2] sm:$0xf]  ;;  %s736_s0 = smov [#allocation5]  }
  0x24   :  { %662 = vmatpush1.bf16.msra.mxu0 %v661_v47  ;;  %v887_v9 = vrot.slane %v77_v5, %v81_v4  ;;  %v889_v10 = vrot.slane %v77_v5, %v89_v6  ;;  %v891_v11 = vrot.slane %v77_v5, %v85_v7  ;;  %s603_s2 = sshll.u32 %s736_s0, 4  ;;  %s604_s2 = int_to_ptr.vmem [resolvable:$true] %s603_s2 }
  0x25   :  { %678 = vmatpush1.bf16.msra.mxu1 %v677_v48  ;;  %s706_s6 = scalar_lea.vmem %s604_s2, 8192  ;;  %p711_p9 = scmp.lt.s32.totalorder %s604_s2, %s604_s2 }
  0x26   :  { %p707_p8 = scmp.ne.s32.totalorder %s604_s2, %s706_s6  ;;  %p712_p10 = scmp.lt.s32.totalorder %s706_s6, %s706_s6 }
  0x27   :  { %615 = vmatmul.mubr.msk.f32.vlgmr.msra.gmra.mrb[0].mxu0 %vm99_vm0, %v29_v49 }
  0x28   :  { %631 = vmatmul.mubr.msk.f32.vlgmr.msra.gmra.mrb[0].mxu1 %vm99_vm0, %v29_v49  ;;  %218 = vmatprep.mubr.f32.mxu0 %v735_v0  ;;  %p713_p11 = por %p712_p10, %p711_p9 }
  0x29   :  { %379 = vmatprep.mubr.f32.mxu1 %v735_v0 }
  0x2a   :  { %p714_p12 = pnand %p713_p11, %p707_p8 }
  0x2b   :  { %616 = vmatmul.mubr.msk.f32.gmra.mrb[2].mxu0 %vm99_vm0, %v30_v50 }
  0x2c   :  { %632 = vmatmul.mubr.msk.f32.gmra.mrb[2].mxu1 %vm99_vm0, %v30_v50  ;;  %224 = vmatprep.mubr.f32.mxu0 %v735_v0 }
  0x2d   :  { %385 = vmatprep.mubr.f32.mxu1 %v735_v0 }
  0x2f   :  { %617 = vmatmul.mubr.msk.f32.gmra.mrb[4].mxu0 %vm99_vm0, %v31_v51 }
  0x30   :  { %633 = vmatmul.mubr.msk.f32.gmra.mrb[4].mxu1 %vm99_vm0, %v31_v51  ;;  %230 = vmatprep.mubr.f32.mxu0 %v735_v0 }
  0x31   :  { %391 = vmatprep.mubr.f32.mxu1 %v735_v0 }
  0x33   :  { %618 = vmatmul.mubr.msk.f32.gmra.mrb[6].mxu0 %vm99_vm0, %v32_v52 }
  0x34   :  { %634 = vmatmul.mubr.msk.f32.gmra.mrb[6].mxu1 %vm99_vm0, %v32_v52  ;;  %236 = vmatprep.mubr.f32.mxu0 %v735_v0 }
  0x35   :  { %397 = vmatprep.mubr.f32.mxu1 %v735_v0 }
  0x37   :  { %619 = vmatmul.mubr.msk.f32.gmra.mrb[8].mxu0 %vm99_vm0, %v33_v53 }
  0x38   :  { %635 = vmatmul.mubr.msk.f32.gmra.mrb[8].mxu1 %vm99_vm0, %v33_v53  ;;  %242 = vmatprep.mubr.f32.mxu0 %v735_v0 }
  0x39   :  { %403 = vmatprep.mubr.f32.mxu1 %v735_v0 }
  0x3b   :  { %620 = vmatmul.mubr.msk.f32.gmra.mrb[10].mxu0 %vm99_vm0, %v34_v54 }
  0x3c   :  { %636 = vmatmul.mubr.msk.f32.gmra.mrb[10].mxu1 %vm99_vm0, %v34_v54  ;;  %248 = vmatprep.mubr.f32.mxu0 %v735_v0 }
  0x3d   :  { %409 = vmatprep.mubr.f32.mxu1 %v735_v0 }
  0x3f   :  { %621 = vmatmul.mubr.msk.f32.gmra.mrb[12].mxu0 %vm99_vm0, %v35_v55 }
  0x40   :  { %637 = vmatmul.mubr.msk.f32.gmra.mrb[12].mxu1 %vm99_vm0, %v35_v55  ;;  %254 = vmatprep.mubr.f32.mxu0 %v735_v0 }
  0x41   :  { %415 = vmatprep.mubr.f32.mxu1 %v735_v0 }
  0x43   :  { %622 = vmatmul.mubr.msk.f32.gmra.mrb[14].mxu0 %vm99_vm0, %v36_v56 }
  0x44   :  { %638 = vmatmul.mubr.msk.f32.gmra.mrb[14].mxu1 %vm99_vm0, %v36_v56  ;;  %260 = vmatprep.mubr.f32.mxu0 %v735_v0 }
  0x45   :  { %421 = vmatprep.mubr.f32.mxu1 %v735_v0 }
  0x47   :  { %623 = vmatmul.mubr.msk.f32.gmra.mrb[16].mxu0 %vm99_vm0, %v37_v57 }
  0x48   :  { %639 = vmatmul.mubr.msk.f32.gmra.mrb[16].mxu1 %vm99_vm0, %v37_v57  ;;  %266 = vmatprep.mubr.f32.mxu0 %v735_v0 }
  0x49   :  { %427 = vmatprep.mubr.f32.mxu1 %v735_v0 }
  0x4b   :  { %624 = vmatmul.mubr.msk.f32.gmra.mrb[18].mxu0 %vm99_vm0, %v38_v58 }
  0x4c   :  { %640 = vmatmul.mubr.msk.f32.gmra.mrb[18].mxu1 %vm99_vm0, %v38_v58  ;;  %272 = vmatprep.mubr.f32.mxu0 %v735_v0 }
  0x4d   :  { %433 = vmatprep.mubr.f32.mxu1 %v735_v0 }
  0x4f   :  { %625 = vmatmul.mubr.msk.f32.gmra.mrb[20].mxu0 %vm99_vm0, %v39_v59 }
  0x50   :  { %641 = vmatmul.mubr.msk.f32.gmra.mrb[20].mxu1 %vm99_vm0, %v39_v59  ;;  %278 = vmatprep.mubr.f32.mxu0 %v735_v0 }
  0x51   :  { %439 = vmatprep.mubr.f32.mxu1 %v735_v0 }
  0x53   :  { %626 = vmatmul.mubr.msk.f32.gmra.mrb[22].mxu0 %vm99_vm0, %v40_v60 }
  0x54   :  { %642 = vmatmul.mubr.msk.f32.gmra.mrb[22].mxu1 %vm99_vm0, %v40_v60  ;;  %284 = vmatprep.mubr.f32.mxu0 %v735_v0 }
  0x55   :  { %445 = vmatprep.mubr.f32.mxu1 %v735_v0 }
  0x57   :  { %627 = vmatmul.mubr.msk.f32.gmra.mrb[24].mxu0 %vm99_vm0, %v41_v61 }
  0x58   :  { %643 = vmatmul.mubr.msk.f32.gmra.mrb[24].mxu1 %vm99_vm0, %v41_v61  ;;  %290 = vmatprep.mubr.f32.mxu0 %v735_v0 }
  0x59   :  { %451 = vmatprep.mubr.f32.mxu1 %v735_v0 }
  0x5b   :  { %628 = vmatmul.mubr.msk.f32.gmra.mrb[26].mxu0 %vm99_vm0, %v42_v62 }
  0x5c   :  { %644 = vmatmul.mubr.msk.f32.gmra.mrb[26].mxu1 %vm99_vm0, %v42_v62  ;;  %296 = vmatprep.mubr.f32.mxu0 %v735_v0 }
  0x5d   :  { %457 = vmatprep.mubr.f32.mxu1 %v735_v0 }
  0x5f   :  { %629 = vmatmul.mubr.msk.f32.gmra.mrb[28].mxu0 %vm99_vm0, %v43_v63 }
  0x60   :  { %645 = vmatmul.mubr.msk.f32.gmra.mrb[28].mxu1 %vm99_vm0, %v43_v63  ;;  %302 = vmatprep.mubr.f32.mxu0 %v735_v0 }
  0x61   :  { %463 = vmatprep.mubr.f32.mxu1 %v735_v0  ;;  %v893_v0 = vrot.slane %v77_v5, %v93_v8 }
  0x63   :  { %630 = vmatmul.mubr.msk.f32.gmra.mrb[30].mxu0 %vm99_vm0, %v44_v1 }
  0x64   :  { %646 = vmatmul.mubr.msk.f32.gmra.mrb[30].mxu1 %vm99_vm0, %v44_v1 }
  0xfa   :  { %v214_v12 = vpop.f32.mrb[0].mxu0 }
  0xfb   :  { %v215_v13 = vadd.f32 %v214_v12, %v887_v9  ;;  %v375_v14 = vpop.f32.mrb[0].mxu1  ;;  %v216_v15 = vpop.f32.mrb[1].mxu0 }
  0xfc   :  { %v376_v16 = vadd.f32 %v375_v14, %v889_v10  ;;  %v217_v17 = vadd.f32 %v216_v15, %v891_v11  ;;  %v377_v18 = vpop.f32.mrb[1].mxu1 }
  0xfd   :  { %v470_v19 = vmax.f32 %v215_v13, 0.0  ;;  %v378_v20 = vadd.f32 %v377_v18, %v893_v0 }
  0xfe   :  { %v472_v21 = vmax.f32 %v376_v16, 0.0  ;;  %v471_v22 = vmax.f32 %v217_v17, 0.0  ;;  %v220_v23 = vpop.f32.mrb[2].mxu0 }
  0xff   :  { %534 = vst [vmem:[#allocation5] sm:$0xff] %v470_v19  ;;  %v473_v24 = vmax.f32 %v378_v20, 0.0  ;;  %v221_v25 = vadd.f32 %v220_v23, %v887_v9  ;;  %v381_v26 = vpop.f32.mrb[2].mxu1  ;;  %v222_v27 = vpop.f32.mrb[3].mxu0 }
 0x100   :  { %536 = vst [vmem:[#allocation5 + $0x10] sm:$0xff] %v472_v21  ;;  %535 = vst [vmem:[#allocation5 + $0x8] sm:$0xff] %v471_v22  ;;  %v382_v28 = vadd.f32 %v381_v26, %v889_v10  ;;  %v223_v29 = vadd.f32 %v222_v27, %v891_v11  ;;  %v383_v30 = vpop.f32.mrb[3].mxu1 }
 0x101   :  { %537 = vst [vmem:[#allocation5 + $0x18] sm:$0xff] %v473_v24  ;;  %v474_v31 = vmax.f32 %v221_v25, 0.0  ;;  %v384_v32 = vadd.f32 %v383_v30, %v893_v0 }
 0x102   :  { %v476_v33 = vmax.f32 %v382_v28, 0.0  ;;  %v475_v34 = vmax.f32 %v223_v29, 0.0  ;;  %v226_v35 = vpop.f32.mrb[4].mxu0 }
 0x103   :  { %538 = vst [vmem:[#allocation5 + $0x20] sm:$0xff] %v474_v31  ;;  %v477_v36 = vmax.f32 %v384_v32, 0.0  ;;  %v227_v37 = vadd.f32 %v226_v35, %v887_v9  ;;  %v387_v38 = vpop.f32.mrb[4].mxu1  ;;  %v228_v39 = vpop.f32.mrb[5].mxu0 }
 0x104   :  { %540 = vst [vmem:[#allocation5 + $0x30] sm:$0xff] %v476_v33  ;;  %539 = vst [vmem:[#allocation5 + $0x28] sm:$0xff] %v475_v34  ;;  %v388_v40 = vadd.f32 %v387_v38, %v889_v10  ;;  %v229_v41 = vadd.f32 %v228_v39, %v891_v11  ;;  %v389_v42 = vpop.f32.mrb[5].mxu1 }
 0x105   :  { %541 = vst [vmem:[#allocation5 + $0x38] sm:$0xff] %v477_v36  ;;  %v478_v43 = vmax.f32 %v227_v37, 0.0  ;;  %v390_v44 = vadd.f32 %v389_v42, %v893_v0 }
 0x106   :  { %v480_v45 = vmax.f32 %v388_v40, 0.0  ;;  %v479_v46 = vmax.f32 %v229_v41, 0.0  ;;  %v232_v47 = vpop.f32.mrb[6].mxu0 }
 0x107   :  { %542 = vst [vmem:[#allocation5 + $0x40] sm:$0xff] %v478_v43  ;;  %v481_v48 = vmax.f32 %v390_v44, 0.0  ;;  %v233_v49 = vadd.f32 %v232_v47, %v887_v9  ;;  %v393_v50 = vpop.f32.mrb[6].mxu1  ;;  %v234_v51 = vpop.f32.mrb[7].mxu0 }
 0x108   :  { %544 = vst [vmem:[#allocation5 + $0x50] sm:$0xff] %v480_v45  ;;  %543 = vst [vmem:[#allocation5 + $0x48] sm:$0xff] %v479_v46  ;;  %v394_v52 = vadd.f32 %v393_v50, %v889_v10  ;;  %v235_v53 = vadd.f32 %v234_v51, %v891_v11  ;;  %v395_v54 = vpop.f32.mrb[7].mxu1 }
 0x109   :  { %545 = vst [vmem:[#allocation5 + $0x58] sm:$0xff] %v481_v48  ;;  %v482_v55 = vmax.f32 %v233_v49, 0.0  ;;  %v396_v56 = vadd.f32 %v395_v54, %v893_v0 }
 0x10a   :  { %v484_v57 = vmax.f32 %v394_v52, 0.0  ;;  %v483_v58 = vmax.f32 %v235_v53, 0.0  ;;  %v238_v59 = vpop.f32.mrb[8].mxu0 }
 0x10b   :  { %546 = vst [vmem:[#allocation5 + $0x60] sm:$0xff] %v482_v55  ;;  %v485_v60 = vmax.f32 %v396_v56, 0.0  ;;  %v239_v61 = vadd.f32 %v238_v59, %v887_v9  ;;  %v399_v62 = vpop.f32.mrb[8].mxu1  ;;  %v240_v63 = vpop.f32.mrb[9].mxu0 }
 0x10c   :  { %548 = vst [vmem:[#allocation5 + $0x70] sm:$0xff] %v484_v57  ;;  %547 = vst [vmem:[#allocation5 + $0x68] sm:$0xff] %v483_v58  ;;  %v400_v1 = vadd.f32 %v399_v62, %v889_v10  ;;  %v241_v2 = vadd.f32 %v240_v63, %v891_v11  ;;  %v401_v3 = vpop.f32.mrb[9].mxu1 }
 0x10d   :  { %549 = vst [vmem:[#allocation5 + $0x78] sm:$0xff] %v485_v60  ;;  %v486_v4 = vmax.f32 %v239_v61, 0.0  ;;  %v402_v5 = vadd.f32 %v401_v3, %v893_v0 }
 0x10e   :  { %v488_v6 = vmax.f32 %v400_v1, 0.0  ;;  %v487_v7 = vmax.f32 %v241_v2, 0.0  ;;  %v244_v8 = vpop.f32.mrb[10].mxu0 }
 0x10f   :  { %550 = vst [vmem:[#allocation5 + $0x80] sm:$0xff] %v486_v4  ;;  %v489_v12 = vmax.f32 %v402_v5, 0.0  ;;  %v245_v13 = vadd.f32 %v244_v8, %v887_v9  ;;  %v405_v14 = vpop.f32.mrb[10].mxu1  ;;  %v246_v15 = vpop.f32.mrb[11].mxu0 }
 0x110   :  { %552 = vst [vmem:[#allocation5 + $0x90] sm:$0xff] %v488_v6  ;;  %551 = vst [vmem:[#allocation5 + $0x88] sm:$0xff] %v487_v7  ;;  %v406_v16 = vadd.f32 %v405_v14, %v889_v10  ;;  %v247_v17 = vadd.f32 %v246_v15, %v891_v11  ;;  %v407_v18 = vpop.f32.mrb[11].mxu1 }
 0x111   :  { %553 = vst [vmem:[#allocation5 + $0x98] sm:$0xff] %v489_v12  ;;  %v490_v19 = vmax.f32 %v245_v13, 0.0  ;;  %v408_v20 = vadd.f32 %v407_v18, %v893_v0 }
 0x112   :  { %v492_v21 = vmax.f32 %v406_v16, 0.0  ;;  %v491_v22 = vmax.f32 %v247_v17, 0.0  ;;  %v250_v23 = vpop.f32.mrb[12].mxu0 }
 0x113   :  { %554 = vst [vmem:[#allocation5 + $0xa0] sm:$0xff] %v490_v19  ;;  %v493_v24 = vmax.f32 %v408_v20, 0.0  ;;  %v251_v25 = vadd.f32 %v250_v23, %v887_v9  ;;  %v411_v26 = vpop.f32.mrb[12].mxu1  ;;  %v252_v27 = vpop.f32.mrb[13].mxu0 }
 0x114   :  { %556 = vst [vmem:[#allocation5 + $0xb0] sm:$0xff] %v492_v21  ;;  %555 = vst [vmem:[#allocation5 + $0xa8] sm:$0xff] %v491_v22  ;;  %v412_v28 = vadd.f32 %v411_v26, %v889_v10  ;;  %v253_v29 = vadd.f32 %v252_v27, %v891_v11  ;;  %v413_v30 = vpop.f32.mrb[13].mxu1 }
 0x115   :  { %557 = vst [vmem:[#allocation5 + $0xb8] sm:$0xff] %v493_v24  ;;  %v494_v31 = vmax.f32 %v251_v25, 0.0  ;;  %v414_v32 = vadd.f32 %v413_v30, %v893_v0 }
 0x116   :  { %v496_v33 = vmax.f32 %v412_v28, 0.0  ;;  %v495_v34 = vmax.f32 %v253_v29, 0.0  ;;  %v256_v35 = vpop.f32.mrb[14].mxu0 }
 0x117   :  { %558 = vst [vmem:[#allocation5 + $0xc0] sm:$0xff] %v494_v31  ;;  %v497_v36 = vmax.f32 %v414_v32, 0.0  ;;  %v257_v37 = vadd.f32 %v256_v35, %v887_v9  ;;  %v417_v38 = vpop.f32.mrb[14].mxu1  ;;  %v258_v39 = vpop.f32.mrb[15].mxu0 }
 0x118   :  { %560 = vst [vmem:[#allocation5 + $0xd0] sm:$0xff] %v496_v33  ;;  %559 = vst [vmem:[#allocation5 + $0xc8] sm:$0xff] %v495_v34  ;;  %v418_v40 = vadd.f32 %v417_v38, %v889_v10  ;;  %v259_v41 = vadd.f32 %v258_v39, %v891_v11  ;;  %v419_v42 = vpop.f32.mrb[15].mxu1 }
 0x119   :  { %561 = vst [vmem:[#allocation5 + $0xd8] sm:$0xff] %v497_v36  ;;  %v498_v43 = vmax.f32 %v257_v37, 0.0  ;;  %v420_v44 = vadd.f32 %v419_v42, %v893_v0 }
 0x11a   :  { %v500_v45 = vmax.f32 %v418_v40, 0.0  ;;  %v499_v46 = vmax.f32 %v259_v41, 0.0  ;;  %v262_v47 = vpop.f32.mrb[16].mxu0 }
 0x11b   :  { %562 = vst [vmem:[#allocation5 + $0xe0] sm:$0xff] %v498_v43  ;;  %v501_v48 = vmax.f32 %v420_v44, 0.0  ;;  %v263_v49 = vadd.f32 %v262_v47, %v887_v9  ;;  %v423_v50 = vpop.f32.mrb[16].mxu1  ;;  %v264_v51 = vpop.f32.mrb[17].mxu0 }
 0x11c   :  { %564 = vst [vmem:[#allocation5 + $0xf0] sm:$0xff] %v500_v45  ;;  %563 = vst [vmem:[#allocation5 + $0xe8] sm:$0xff] %v499_v46  ;;  %v424_v52 = vadd.f32 %v423_v50, %v889_v10  ;;  %v265_v53 = vadd.f32 %v264_v51, %v891_v11  ;;  %v425_v54 = vpop.f32.mrb[17].mxu1 }
 0x11d   :  { %565 = vst [vmem:[#allocation5 + $0xf8] sm:$0xff] %v501_v48  ;;  %v502_v55 = vmax.f32 %v263_v49, 0.0  ;;  %v426_v56 = vadd.f32 %v425_v54, %v893_v0 }
 0x11e   :  { %v504_v57 = vmax.f32 %v424_v52, 0.0  ;;  %v503_v58 = vmax.f32 %v265_v53, 0.0  ;;  %v268_v59 = vpop.f32.mrb[18].mxu0 }
 0x11f   :  { %566 = vst [vmem:[#allocation5 + $0x100] sm:$0xff] %v502_v55  ;;  %v505_v60 = vmax.f32 %v426_v56, 0.0  ;;  %v269_v61 = vadd.f32 %v268_v59, %v887_v9  ;;  %v429_v62 = vpop.f32.mrb[18].mxu1  ;;  %v270_v63 = vpop.f32.mrb[19].mxu0 }
 0x120   :  { %568 = vst [vmem:[#allocation5 + $0x110] sm:$0xff] %v504_v57  ;;  %567 = vst [vmem:[#allocation5 + $0x108] sm:$0xff] %v503_v58  ;;  %v430_v1 = vadd.f32 %v429_v62, %v889_v10  ;;  %v271_v2 = vadd.f32 %v270_v63, %v891_v11  ;;  %v431_v3 = vpop.f32.mrb[19].mxu1 }
 0x121   :  { %569 = vst [vmem:[#allocation5 + $0x118] sm:$0xff] %v505_v60  ;;  %v506_v4 = vmax.f32 %v269_v61, 0.0  ;;  %v432_v5 = vadd.f32 %v431_v3, %v893_v0 }
 0x122   :  { %v508_v6 = vmax.f32 %v430_v1, 0.0  ;;  %v507_v7 = vmax.f32 %v271_v2, 0.0  ;;  %v274_v8 = vpop.f32.mrb[20].mxu0 }
 0x123   :  { %570 = vst [vmem:[#allocation5 + $0x120] sm:$0xff] %v506_v4  ;;  %v509_v12 = vmax.f32 %v432_v5, 0.0  ;;  %v275_v13 = vadd.f32 %v274_v8, %v887_v9  ;;  %v435_v14 = vpop.f32.mrb[20].mxu1  ;;  %v276_v15 = vpop.f32.mrb[21].mxu0 }
 0x124   :  { %572 = vst [vmem:[#allocation5 + $0x130] sm:$0xff] %v508_v6  ;;  %571 = vst [vmem:[#allocation5 + $0x128] sm:$0xff] %v507_v7  ;;  %v436_v16 = vadd.f32 %v435_v14, %v889_v10  ;;  %v277_v17 = vadd.f32 %v276_v15, %v891_v11  ;;  %v437_v18 = vpop.f32.mrb[21].mxu1 }
 0x125   :  { %573 = vst [vmem:[#allocation5 + $0x138] sm:$0xff] %v509_v12  ;;  %v510_v19 = vmax.f32 %v275_v13, 0.0  ;;  %v438_v20 = vadd.f32 %v437_v18, %v893_v0 }
 0x126   :  { %v512_v21 = vmax.f32 %v436_v16, 0.0  ;;  %v511_v22 = vmax.f32 %v277_v17, 0.0  ;;  %v280_v23 = vpop.f32.mrb[22].mxu0 }
 0x127   :  { %574 = vst [vmem:[#allocation5 + $0x140] sm:$0xff] %v510_v19  ;;  %v513_v24 = vmax.f32 %v438_v20, 0.0  ;;  %v281_v25 = vadd.f32 %v280_v23, %v887_v9  ;;  %v441_v26 = vpop.f32.mrb[22].mxu1  ;;  %v282_v27 = vpop.f32.mrb[23].mxu0 }
 0x128   :  { %576 = vst [vmem:[#allocation5 + $0x150] sm:$0xff] %v512_v21  ;;  %575 = vst [vmem:[#allocation5 + $0x148] sm:$0xff] %v511_v22  ;;  %v442_v28 = vadd.f32 %v441_v26, %v889_v10  ;;  %v283_v29 = vadd.f32 %v282_v27, %v891_v11  ;;  %v443_v30 = vpop.f32.mrb[23].mxu1 }
 0x129   :  { %577 = vst [vmem:[#allocation5 + $0x158] sm:$0xff] %v513_v24  ;;  %v514_v31 = vmax.f32 %v281_v25, 0.0  ;;  %v444_v32 = vadd.f32 %v443_v30, %v893_v0 }
 0x12a   :  { %v516_v33 = vmax.f32 %v442_v28, 0.0  ;;  %v515_v34 = vmax.f32 %v283_v29, 0.0  ;;  %v286_v35 = vpop.f32.mrb[24].mxu0 }
 0x12b   :  { %578 = vst [vmem:[#allocation5 + $0x160] sm:$0xff] %v514_v31  ;;  %v517_v36 = vmax.f32 %v444_v32, 0.0  ;;  %v287_v37 = vadd.f32 %v286_v35, %v887_v9  ;;  %v447_v38 = vpop.f32.mrb[24].mxu1  ;;  %v288_v39 = vpop.f32.mrb[25].mxu0 }
 0x12c   :  { %580 = vst [vmem:[#allocation5 + $0x170] sm:$0xff] %v516_v33  ;;  %579 = vst [vmem:[#allocation5 + $0x168] sm:$0xff] %v515_v34  ;;  %v448_v40 = vadd.f32 %v447_v38, %v889_v10  ;;  %v289_v41 = vadd.f32 %v288_v39, %v891_v11  ;;  %v449_v42 = vpop.f32.mrb[25].mxu1 }
 0x12d   :  { %581 = vst [vmem:[#allocation5 + $0x178] sm:$0xff] %v517_v36  ;;  %v518_v43 = vmax.f32 %v287_v37, 0.0  ;;  %v450_v44 = vadd.f32 %v449_v42, %v893_v0 }
 0x12e   :  { %v520_v45 = vmax.f32 %v448_v40, 0.0  ;;  %v519_v46 = vmax.f32 %v289_v41, 0.0  ;;  %v292_v47 = vpop.f32.mrb[26].mxu0 }
 0x12f   :  { %582 = vst [vmem:[#allocation5 + $0x180] sm:$0xff] %v518_v43  ;;  %v521_v48 = vmax.f32 %v450_v44, 0.0  ;;  %v293_v49 = vadd.f32 %v292_v47, %v887_v9  ;;  %v453_v50 = vpop.f32.mrb[26].mxu1  ;;  %v294_v51 = vpop.f32.mrb[27].mxu0 }
 0x130   :  { %584 = vst [vmem:[#allocation5 + $0x190] sm:$0xff] %v520_v45  ;;  %583 = vst [vmem:[#allocation5 + $0x188] sm:$0xff] %v519_v46  ;;  %v454_v52 = vadd.f32 %v453_v50, %v889_v10  ;;  %v295_v53 = vadd.f32 %v294_v51, %v891_v11  ;;  %v455_v54 = vpop.f32.mrb[27].mxu1 }
 0x131   :  { %585 = vst [vmem:[#allocation5 + $0x198] sm:$0xff] %v521_v48  ;;  %v522_v55 = vmax.f32 %v293_v49, 0.0  ;;  %v456_v56 = vadd.f32 %v455_v54, %v893_v0 }
 0x132   :  { %v524_v57 = vmax.f32 %v454_v52, 0.0  ;;  %v523_v58 = vmax.f32 %v295_v53, 0.0  ;;  %v298_v59 = vpop.f32.mrb[28].mxu0 }
 0x133   :  { %586 = vst [vmem:[#allocation5 + $0x1a0] sm:$0xff] %v522_v55  ;;  %v525_v60 = vmax.f32 %v456_v56, 0.0  ;;  %v299_v61 = vadd.f32 %v298_v59, %v887_v9  ;;  %v459_v62 = vpop.f32.mrb[28].mxu1  ;;  %v300_v63 = vpop.f32.mrb[29].mxu0 }
 0x134   :  { %588 = vst [vmem:[#allocation5 + $0x1b0] sm:$0xff] %v524_v57  ;;  %587 = vst [vmem:[#allocation5 + $0x1a8] sm:$0xff] %v523_v58  ;;  %v460_v1 = vadd.f32 %v459_v62, %v889_v10  ;;  %v301_v2 = vadd.f32 %v300_v63, %v891_v11  ;;  %v461_v3 = vpop.f32.mrb[29].mxu1 }
 0x135   :  { %589 = vst [vmem:[#allocation5 + $0x1b8] sm:$0xff] %v525_v60  ;;  %v526_v4 = vmax.f32 %v299_v61, 0.0  ;;  %v462_v5 = vadd.f32 %v461_v3, %v893_v0 }
 0x136   :  { %v528_v6 = vmax.f32 %v460_v1, 0.0  ;;  %v527_v7 = vmax.f32 %v301_v2, 0.0  ;;  %v304_v8 = vpop.f32.mrb[30].mxu0 }
 0x137   :  { %590 = vst [vmem:[#allocation5 + $0x1c0] sm:$0xff] %v526_v4  ;;  %v529_v12 = vmax.f32 %v462_v5, 0.0  ;;  %v305_v13 = vadd.f32 %v304_v8, %v887_v9  ;;  %v465_v14 = vpop.f32.mrb[30].mxu1  ;;  %v306_v15 = vpop.f32.mrb[31].mxu0 }
 0x138   :  { %592 = vst [vmem:[#allocation5 + $0x1d0] sm:$0xff] %v528_v6  ;;  %591 = vst [vmem:[#allocation5 + $0x1c8] sm:$0xff] %v527_v7  ;;  %v466_v16 = vadd.f32 %v465_v14, %v889_v10  ;;  %v307_v17 = vadd.f32 %v306_v15, %v891_v11  ;;  %v467_v18 = vpop.f32.mrb[31].mxu1 }
 0x139   :  { %593 = vst [vmem:[#allocation5 + $0x1d8] sm:$0xff] %v529_v12  ;;  %v530_v19 = vmax.f32 %v305_v13, 0.0  ;;  %v468_v20 = vadd.f32 %v467_v18, %v893_v0 }
 0x13a   :  { %v532_v21 = vmax.f32 %v466_v16, 0.0  ;;  %v531_v22 = vmax.f32 %v307_v17, 0.0 }
 0x13b   :  { %594 = vst [vmem:[#allocation5 + $0x1e0] sm:$0xff] %v530_v19  ;;  %v533_v23 = vmax.f32 %v468_v20, 0.0 }
 0x13c   :  { %596 = vst [vmem:[#allocation5 + $0x1f0] sm:$0xff] %v532_v21  ;;  %595 = vst [vmem:[#allocation5 + $0x1e8] sm:$0xff] %v531_v22 }
 0x13d   :  { %597 = vst [vmem:[#allocation5 + $0x1f8] sm:$0xff] %v533_v23 }
 0x13e   :  { %717 = shalt.err (!%p714_p12)
}
 0x13f   :  { %s718_s9 = scalar_lea.hbm %s977_s3, 8192 }
 0x140   :  { %p719_p13 = scmp.ne.s32.totalorder %s977_s3, %s718_s9  ;;  %p722_p0 = scmp.lt.u32.totalorder %s718_s9, %s977_s3 }
 0x142   :  { %p724_p1 = pnand %p722_p0, %p719_p13 }
 0x144   :  { %727 = shalt.err (!%p724_p1)
}
 0x145   :  { %609 = dma.vmem_to_hbm [thread:$0]  %s604_s2, 8192, %s977_s3, [#allocation4], %s733_s22, %s733_s22, %s734_s23  }
 0x146   :  { %730 = dma.done.wait [#allocation4], 8192  }
 0x147   :  { %731 = vsyncadd [#allocation4], 4294959104 }
 0x148   :  { %613 = vsyncpa [#allocation3], 1 }
 0x149   :  { %614 = vsyncpa [#allocation4], 1 }

</bundles_post_ra>
